<compile_context>
chip_gen: v7x
topology: tpu7x:2x2x1
jax: 0.10.0
libtpu: 0.0.40
codegen_flags: <defaults>
</compile_context>

<pallas_src>
import jax
import jax.numpy as jnp
from jax.experimental import pallas as pl
from jax.experimental.pallas import tpu as pltpu


def _round_up(x, m):
    return ((x + m - 1) // m) * m


def _pack_factor(num_classes, cap=16):
    """Largest power-of-two r (<= cap) such that r * num_classes <= 128 lanes."""
    r = 1
    while r * 2 <= cap and (r * 2) * num_classes <= 128:
        r *= 2
    return r


# ----------------------------------------------------------------------------
# Fused Pallas kernel: patch-embed matmul (+folded normalization, ReLU)
#                      -> 1x1-conv head matmul, lane-dense packed bf16 logits out.
# All operands are row-packed (r spatial positions per row, block-diag weights),
# so every store is lane-dense with no class-dim padding bytes.
# ----------------------------------------------------------------------------
def _fused_backbone_head_kernel(x_ref, w1_ref, b1_ref, w2_ref, b2_ref, o_ref):
    # backbone patch-embed (normalization folded into w1/b1), f32 accumulation
    feat = jnp.dot(x_ref[...], w1_ref[...], preferred_element_type=jnp.float32)
    feat = jnp.maximum(feat + b1_ref[...], 0.0)
    # 1x1-conv sem_seg head on the packed layout (block-diagonal weights)
    logits = jnp.dot(feat.astype(jnp.bfloat16), w2_ref[...],
                     preferred_element_type=jnp.float32)
    o_ref[...] = (logits + b2_ref[...]).astype(o_ref.dtype)


def fused_backbone_head(x_packed, w1b, b1b, w2b, b2b, *, tile_m=16384, pack_r=1):
    """relu(x @ W1 + b1) @ W2 + b2 on the row-packed layout.

    x_packed : (M_r, r*K)  bf16, r spatial rows packed per kernel row
    w1b, b1b : (r*K, r*Cf) bf16 block-diagonal, (1, r*Cf) f32
    w2b, b2b : (r*Cf, r*nc) bf16 block-diagonal, (1, r*nc) f32
    returns  : (M_r, r*nc) bf16 packed logits
    """
    M_r, rK = x_packed.shape
    rCf = w1b.shape[1]
    rNC = w2b.shape[1]

    # tile_m is expressed in *unpacked* spatial rows; convert to packed rows.
    tile_rows = max(1, tile_m // pack_r)
    if tile_rows < M_r:
        # interior blocks: keep the sublane dim a multiple of 16 (bf16 packs (16,128))
        tile_rows = max(16, (tile_rows // 16) * 16)
    if tile_rows >= M_r:
        tile_rows = M_r      # single full-extent block (always a legal block shape)

    grid = (pl.cdiv(M_r, tile_rows),)   # boundary block handled by Pallas masking

    flops = 2 * M_r * rK * rCf + 2 * M_r * rCf * rNC
    bytes_accessed = (2 * M_r * (rK + rNC)            # bf16 activations in/out
                      + 2 * (rK * rCf + rCf * rNC)    # bf16 resident weights
                      + 4 * (rCf + rNC))              # f32 biases

    return pl.pallas_call(
        _fused_backbone_head_kernel,
        out_shape=jax.ShapeDtypeStruct((M_r, rNC), jnp.bfloat16),
        grid_spec=pltpu.PrefetchScalarGridSpec(
            num_scalar_prefetch=0,
            grid=grid,
            in_specs=[
                pl.BlockSpec((tile_rows, rK), lambda i: (i, 0)),  # streamed over rows
                pl.BlockSpec((rK, rCf), lambda i: (0, 0)),        # weights stay resident
                pl.BlockSpec((1, rCf), lambda i: (0, 0)),
                pl.BlockSpec((rCf, rNC), lambda i: (0, 0)),
                pl.BlockSpec((1, rNC), lambda i: (0, 0)),
            ],
            out_specs=pl.BlockSpec((tile_rows, rNC), lambda i: (i, 0)),
        ),
        compiler_params=pltpu.CompilerParams(
            dimension_semantics=("parallel",),        # v7x: shard rows across both TCs
            vmem_limit_bytes=28 * 1024 * 1024,        # ~8 MiB used at default tile; safe on v7x (64 MiB)
        ),
        cost_estimate=pl.CostEstimate(flops=flops, transcendentals=0,
                                      bytes_accessed=bytes_accessed),
    )(x_packed, w1b, b1b, w2b, b2b)


# ----------------------------------------------------------------------------
# One-time weight prep: fold normalization into the patch-embed weights and
# build block-diagonal row-packed weights (lane-dense logits, no class padding).
# ----------------------------------------------------------------------------
def prepare_fused_params(params):
    patch = int(params["patch"])
    num_classes = int(params["num_classes"])

    mean = params["pixel_mean"].astype(jnp.float32)
    inv_std = 1.0 / params["pixel_std"].astype(jnp.float32)

    w_patch = params["w_patch"].astype(jnp.float32)   # (patch*patch*C, Cf)
    b_patch = params["b_patch"].astype(jnp.float32)   # (Cf,)

    # fold (x - mean) / std into w1 / b1; flat patch index k has channel c = k % C
    inv_std_k = jnp.tile(inv_std, patch * patch)
    mean_k = jnp.tile(mean, patch * patch)
    w1 = w_patch * inv_std_k[:, None]
    b1 = b_patch - (mean_k * inv_std_k) @ w_patch

    w2 = params["w_head"].astype(jnp.float32)          # (Cf, nc)
    b2 = params["b_head"].astype(jnp.float32)          # (nc,)

    # Row-packing: r spatial positions per kernel row -> logits writeback is
    # lane-dense with zero padding bytes (vs 16x inflation when padding nc=8 to 128).
    r = _pack_factor(num_classes)
    eye = jnp.eye(r, dtype=jnp.float32)
    w1b = jnp.kron(eye, w1).astype(jnp.bfloat16)        # (r*K,  r*Cf) block-diag
    b1b = jnp.tile(b1, r).reshape(1, -1).astype(jnp.float32)
    w2b = jnp.kron(eye, w2).astype(jnp.bfloat16)        # (r*Cf, r*nc) block-diag
    b2b = jnp.tile(b2, r).reshape(1, -1).astype(jnp.float32)
    return r, w1b, b1b, w2b, b2b


# ----------------------------------------------------------------------------
# Postprocess: batched crop + bilinear resize in bf16; upcast at the very end.
# ----------------------------------------------------------------------------
def sem_seg_postprocess_batched(up_nhwc, image_sizes, heights, widths):
    N, _, _, K = up_nhwc.shape
    uniform = (len(set(image_sizes)) == 1 and len(set(heights)) == 1
               and len(set(widths)) == 1)
    if uniform:
        h0, w0 = image_sizes[0]
        rr = up_nhwc[:, :h0, :w0, :]
        rr = jax.image.resize(rr, (N, heights[0], widths[0], K), method="bilinear")
        rr = jnp.transpose(rr, (0, 3, 1, 2)).astype(jnp.float32)
        return [rr[i] for i in range(N)]
    out = []
    for i in range(N):
        h0, w0 = image_sizes[i]
        rr = up_nhwc[i, :h0, :w0, :]
        rr = jax.image.resize(rr, (heights[i], widths[i], K), method="bilinear")
        out.append(jnp.transpose(rr, (2, 0, 1)).astype(jnp.float32))
    return out


# ----------------------------------------------------------------------------
# Forward pass mirroring SemanticSegmentor.forward (inference).
# ----------------------------------------------------------------------------
def semantic_segmentor_forward(batched_inputs, params, *, tile_m=16384):
    # ImageList.from_tensors(images, 0): same-size images -> no padding needed.
    images = jnp.stack([x["image"] for x in batched_inputs])
    N, C, H, W = images.shape
    patch = int(params["patch"])
    num_classes = int(params["num_classes"])
    Hp, Wp = H // patch, W // patch
    M = N * Hp * Wp
    K = patch * patch * C

    r, w1b, b1b, w2b, b2b = prepare_fused_params(params)

    # Cast to bf16 BEFORE the im2col relayout (XLA fuses the convert into the
    # transpose: half the relayout bytes, and no separate astype pass before the
    # kernel).  Raw uint8-range pixels are exact in bf16; ~1 ulp for float inputs.
    # TODO(synk): express this strided patch gather with a BlockSpec index_map over
    # the NHWC image so the relayout never round-trips HBM at all.
    x = jnp.transpose(images.astype(jnp.bfloat16), (0, 2, 3, 1))     # NHWC
    x = x.reshape(N, Hp, patch, Wp, patch, C)
    x = jnp.transpose(x, (0, 1, 3, 2, 4, 5)).reshape(M, K)

    # Row-pack r spatial positions per kernel row (free row-major reshape).
    M_round = _round_up(M, r)
    if M_round != M:   # rare: r is a power of two and Hp*Wp is normally a multiple
        x = jnp.pad(x, ((0, M_round - M), (0, 0)))
    x_packed = x.reshape(M_round // r, r * K)

    # fused backbone + sem_seg_head (single Pallas kernel, row-streamed, bf16 out)
    logits = fused_backbone_head(x_packed, w1b, b1b, w2b, b2b,
                                 tile_m=tile_m, pack_r=r)            # (M_round/r, r*nc)
    logits = logits.reshape(M_round, num_classes)[:M]                # un-pack (free)
    logits = logits.reshape(N, Hp, Wp, num_classes)                  # bf16

    # head upsample: F.interpolate(scale=common_stride, bilinear, align_corners=False)
    # kept in bf16 -- this full-resolution pass is the dominant HBM consumer.
    up = jax.image.resize(logits, (N, H, W, num_classes), method="bilinear")

    # 'sem_seg' not in batched_inputs -> targets=None (inference, no loss path).
    image_sizes = [(H, W)] * N
    heights = [bi["height"] if bi.get("height") is not None else image_sizes[i][0]
               for i, bi in enumerate(batched_inputs)]
    widths = [bi["width"] if bi.get("width") is not None else image_sizes[i][1]
              for i, bi in enumerate(batched_inputs)]
    results = sem_seg_postprocess_batched(up, image_sizes, heights, widths)
    return [{"sem_seg": res} for res in results]


# ----------------------------------------------------------------------------
# Pure-JAX reference (float32) for a correctness sanity check.
# ----------------------------------------------------------------------------
def _reference_forward(images, params):
    N, C, H, W = images.shape
    patch = int(params["patch"])
    K = int(params["num_classes"])
    mean = params["pixel_mean"].reshape(1, C, 1, 1)
    std = params["pixel_std"].reshape(1, C, 1, 1)
    xn = (images - mean) / std
    x = jnp.transpose(xn, (0, 2, 3, 1))
    Hp, Wp = H // patch, W // patch
    x = x.reshape(N, Hp, patch, Wp, patch, C)
    x = jnp.transpose(x, (0, 1, 3, 2, 4, 5)).reshape(N * Hp * Wp, patch * patch * C)
    feat = jnp.maximum(x @ params["w_patch"] + params["b_patch"], 0.0)
    logits = (feat @ params["w_head"] + params["b_head"]).reshape(N, Hp, Wp, K)
    up = jax.image.resize(logits, (N, H, W, K), method="bilinear")
    return jnp.transpose(up, (0, 3, 1, 2))


# ----------------------------------------------------------------------------
# Example run
# ----------------------------------------------------------------------------
if __name__ == "__main__":
    key = jax.random.PRNGKey(0)
    k_img, k_wp, k_wh = jax.random.split(key, 3)

    N, C, H, W = 2, 3, 64, 64
    patch = 4              # backbone stride / head common_stride
    C_feat = 32
    num_classes = 8

    images = jax.random.uniform(k_img, (N, C, H, W), jnp.float32) * 255.0

    params = {
        "pixel_mean": jnp.array([103.530, 116.280, 123.675], jnp.float32),
        "pixel_std": jnp.array([57.375, 57.120, 58.395], jnp.float32),
        "w_patch": jax.random.normal(k_wp, (patch * patch * C, C_feat), jnp.float32) * 0.05,
        "b_patch": jnp.zeros((C_feat,), jnp.float32),
        "w_head": jax.random.normal(k_wh, (C_feat, num_classes), jnp.float32) * 0.05,
        "b_head": jnp.zeros((num_classes,), jnp.float32),
        "patch": patch,
        "num_classes": num_classes,
    }

    batched_inputs = [
        {"image": images[i], "height": H, "width": W} for i in range(N)
    ]

    # M = N*Hp*Wp = 512 rows, pack r=16 -> 32 packed rows; tile_m=256 -> 16 packed
    # rows per block -> 2 grid steps (exercises the streaming pipeline).
    # Production default is tile_m=16384.
    outputs = semantic_segmentor_forward(batched_inputs, params, tile_m=256)

    ref = _reference_forward(images, params)
    for i, out in enumerate(outputs):
        r = jax.block_until_ready(out["sem_seg"])
        assert r.shape == (num_classes, H, W)
        # output resolution == padded image size here, so postprocess resize is identity;
        # loose tolerance accounts for bf16 MXU operands + bf16 upsample.
        max_err = float(jnp.max(jnp.abs(r - ref[i])))
        assert max_err < 0.1, f"mismatch vs reference: {max_err}"

    print("KERNEL_OK")
</pallas_src>

<mosaic_0001>
module attributes {stable_mosaic.version = 11 : i64} {
  func.func @_fused_backbone_head_kernel(%arg0: i32, %arg1: memref<16x768xbf16, #tpu.memory_space<vmem>>, %arg2: memref<768x512xbf16, #tpu.memory_space<vmem>>, %arg3: memref<1x512xf32, #tpu.memory_space<vmem>>, %arg4: memref<512x128xbf16, #tpu.memory_space<vmem>>, %arg5: memref<1x128xf32, #tpu.memory_space<vmem>>, %arg6: memref<16x128xbf16, #tpu.memory_space<vmem>>) attributes {dimension_semantics = [#tpu.dimension_semantics<parallel>], iteration_bounds = array<i64: 2>, scalar_prefetch = 0 : i64, scratch_operands = 0 : i64, tpu.core_type = #tpu.core_type<tc>, window_params = [{transform_indices = @transform_0, window_bounds = array<i64: 16, 768>}, {pipeline_mode = #tpu.pipeline_mode<synchronous>, transform_indices = @transform_1, window_bounds = array<i64: 768, 512>}, {pipeline_mode = #tpu.pipeline_mode<synchronous>, transform_indices = @transform_2, window_bounds = array<i64: 1, 512>}, {pipeline_mode = #tpu.pipeline_mode<synchronous>, transform_indices = @transform_3, window_bounds = array<i64: 512, 128>}, {pipeline_mode = #tpu.pipeline_mode<synchronous>, transform_indices = @transform_4, window_bounds = array<i64: 1, 128>}, {transform_indices = @transform_5, window_bounds = array<i64: 16, 128>}]} {
    %c0 = arith.constant 0 : index
    %c0_0 = arith.constant 0 : index
    %0 = vector.load %arg1[%c0, %c0_0] : memref<16x768xbf16, #tpu.memory_space<vmem>>, vector<16x768xbf16>
    %c0_1 = arith.constant 0 : index
    %c0_2 = arith.constant 0 : index
    %1 = vector.load %arg2[%c0_1, %c0_2] : memref<768x512xbf16, #tpu.memory_space<vmem>>, vector<768x512xbf16>
    %cst = arith.constant dense<0.000000e+00> : vector<16x512xf32>
    %2 = tpu.matmul %0, %1, %cst {dimension_numbers = #tpu.dot_dimension_numbers<[1], [0], [0], [1], [0, 0, 1, 1], [], []>} : vector<16x768xbf16>, vector<768x512xbf16>, vector<16x512xf32> -> vector<16x512xf32>
    %c0_3 = arith.constant 0 : index
    %c0_4 = arith.constant 0 : index
    %3 = vector.load %arg3[%c0_3, %c0_4] : memref<1x512xf32, #tpu.memory_space<vmem>>, vector<1x512xf32>
    %4 = vector.broadcast %3 : vector<1x512xf32> to vector<16x512xf32>
    %5 = arith.addf %2, %4 : vector<16x512xf32>
    %cst_5 = arith.constant 0.000000e+00 : f32
    %6 = vector.broadcast %cst_5 : f32 to vector<16x512xf32>
    %7 = arith.maximumf %5, %6 : vector<16x512xf32>
    %8 = arith.truncf %7 : vector<16x512xf32> to vector<16x512xbf16>
    %c0_6 = arith.constant 0 : index
    %c0_7 = arith.constant 0 : index
    %9 = vector.load %arg4[%c0_6, %c0_7] : memref<512x128xbf16, #tpu.memory_space<vmem>>, vector<512x128xbf16>
    %cst_8 = arith.constant dense<0.000000e+00> : vector<16x128xf32>
    %10 = tpu.matmul %8, %9, %cst_8 {dimension_numbers = #tpu.dot_dimension_numbers<[1], [0], [0], [1], [0, 0, 1, 1], [], []>} : vector<16x512xbf16>, vector<512x128xbf16>, vector<16x128xf32> -> vector<16x128xf32>
    %c0_9 = arith.constant 0 : index
    %c0_10 = arith.constant 0 : index
    %11 = vector.load %arg5[%c0_9, %c0_10] : memref<1x128xf32, #tpu.memory_space<vmem>>, vector<1x128xf32>
    %12 = vector.broadcast %11 : vector<1x128xf32> to vector<16x128xf32>
    %13 = arith.addf %10, %12 : vector<16x128xf32>
    %14 = arith.truncf %13 : vector<16x128xf32> to vector<16x128xbf16>
    %c0_11 = arith.constant 0 : index
    %c0_12 = arith.constant 0 : index
    %15 = vector.load %arg6[%c0_11, %c0_12] : memref<16x128xbf16, #tpu.memory_space<vmem>>, vector<16x128xbf16>
    tpu.vector_store %arg6[%c0_11, %c0_12], %14 {strides = array<i32>} : memref<16x128xbf16, #tpu.memory_space<vmem>>, vector<16x128xbf16>,
    return
  }
  func.func @transform_0(%arg0: i32) -> (i32, i32) {
    %c0_i32 = arith.constant 0 : i32
    %c0_i32_0 = arith.constant 0 : i32
    return %arg0, %c0_i32 : i32, i32
  }
  func.func @transform_1(%arg0: i32) -> (i32, i32) {
    %c0_i32 = arith.constant 0 : i32
    %c0_i32_0 = arith.constant 0 : i32
    %c0_i32_1 = arith.constant 0 : i32
    return %c0_i32, %c0_i32_0 : i32, i32
  }
  func.func @transform_2(%arg0: i32) -> (i32, i32) {
    %c0_i32 = arith.constant 0 : i32
    %c0_i32_0 = arith.constant 0 : i32
    %c0_i32_1 = arith.constant 0 : i32
    return %c0_i32, %c0_i32_0 : i32, i32
  }
  func.func @transform_3(%arg0: i32) -> (i32, i32) {
    %c0_i32 = arith.constant 0 : i32
    %c0_i32_0 = arith.constant 0 : i32
    %c0_i32_1 = arith.constant 0 : i32
    return %c0_i32, %c0_i32_0 : i32, i32
  }
  func.func @transform_4(%arg0: i32) -> (i32, i32) {
    %c0_i32 = arith.constant 0 : i32
    %c0_i32_0 = arith.constant 0 : i32
    %c0_i32_1 = arith.constant 0 : i32
    return %c0_i32, %c0_i32_0 : i32, i32
  }
  func.func @transform_5(%arg0: i32) -> (i32, i32) {
    %c0_i32 = arith.constant 0 : i32
    %c0_i32_0 = arith.constant 0 : i32
    return %arg0, %c0_i32 : i32, i32
  }
}

</mosaic_0001>

<bundles_post_ra>
// kernel: tpu_custom_call.1
= control target key start
LH: loop header
LB: loop body
LE: loop exit
PB: predicated region body
PF: predicated region fallthrough
CT: control target
= control target key end

     0   :  { %10 = vsyncpa [#allocation3], 0  ;;  %s3399_s0 = inlined_call_operand.hbm [shape: bf16[32,768], index: 0, kind: input, shape index: {}]   ;;  %s3400_s1 = inlined_call_operand.hbm [shape: bf16[768,512], index: 1, kind: input, shape index: {}]   ;;  %s3401_s2 = inlined_call_operand.vmem [shape: f32[1,512], index: 2, kind: input, shape index: {}]   ;;  %s3402_s3 = inlined_call_operand.hbm [shape: bf16[512,128], index: 3, kind: input, shape index: {}]   ;;  %s3403_s4 = inlined_call_operand.vmem [shape: f32[1,128], index: 4, kind: input, shape index: {}]   ;;  %s3404_s5 = inlined_call_operand.hbm [shape: bf16[32,128], index: 5, kind: output, shape index: {}]  }
   0x1   :  { %12 = vsyncpa [#allocation3 + $0x1], 0 }
   0x2   :  { %13 = vsyncpa [#allocation6], 0 }
   0x3   :  { %14 = vsyncpa [#allocation4], 0 }
   0x4   :  { %16 = vsyncpa [#allocation4 + $0x1], 0  ;;  %s3150_s18 = smov 0   ;;  %s3152_s19 = smov 0  }
   0x5   :  { %s3154_s20 = smov 0   ;;  %s3156_s21 = smov 0  }
   0x6 LB: > { %s3171_s22 = sadd.s32 4294967295, %s3106_s21   ;;  %s2217_s23 = sadd.s32 4294967294, %s3106_s21   ;;  %s3106_s21 = sphi %s3156_s21, %s3424_s21   ;;  %s3102_s20 = sphi %s3154_s20, %s3423_s20   ;;  %s3098_s19 = sphi %s3152_s19, %s3422_s19   ;;  %s3094_s18 = sphi %s3150_s18, %s3421_s18  }
   0x7   : > { %p42_p0 = scmp.ne.s32.totalorder %s3098_s19, %s3094_s18  ;;  %p3405_p1 = scmp.eq.s32.totalorder %s3171_s22, 0 }
   0x8   : > { %p156_p3 = scmp.eq.s32.totalorder %s2217_s23, 1  ;;  %p2218_p5 = scmp.ge.s32.totalorder %s3106_s21, 1 }
   0x9   : > { %p3180_p4 = por %p3405_p1, %p42_p0  ;;  %p163_p7 = scmp.lt.s32.totalorder %s3106_s21, 3 }
   0xa   : > { %p3185_p6 = por %p156_p3, %p42_p0  ;;  %s3108_s27 = smov [#allocation5]  }
   0xb   : > { %s3408_s24 = scalar_select %p3180_p4, 1, 0 }
   0xc   : > { %s3409_s25 = scalar_select %p3185_p6, 1, 0 }
   0xd   : > { %p3190_p8 = pnand %p2218_p5, %p163_p7  ;;  %s175_s28 = sshll.u32 %s3108_s27, 4  ;;  %s3194_s28 = int_to_ptr.vmem [resolvable:$true] %s175_s28 }
   0xe   : > { %s3109_s30 = smov [#allocation7]   ;;  %s2950_s9 = scalar_lea.hbm %s3400_s1, 24576 }
   0xf   : > { %p2558_p9 = pneg %p3190_p8  ;;  %s191_s6 = sshll.u32 %s3109_s30, 4  ;;  %s3205_s6 = int_to_ptr.vmem [resolvable:$true] %s191_s6 }
  0x10   : > { %p2951_p12 = scmp.ne.s32.totalorder %s3400_s1, %s2950_s9  ;;  %p2957_p5 = scmp.lt.u32.totalorder %s2950_s9, %s3400_s1 }
  0x11   : > { %p3201_p11 = pnand %p2558_p9, %p3405_p1 }
  0x13   : > { %p2952_p13 = pneg %p3201_p11 }
  0x15   : > { %p2953_p0 = pnand %p2952_p13, %p2951_p12 }
  0x17   : > { %p2954_p3 = pneg %p2953_p0 }
  0x19   : > { %p2959_p7 = pnand %p2957_p5, %p2954_p3 }
  0x1b   : > { %2962 = shalt.err (!%p2959_p7)
}
  0x1c   : > { %s2963_s14 = scalar_lea.vmem %s3194_s28, 24576  ;;  %p2971_p2 = scmp.lt.s32.totalorder %s3194_s28, %s3194_s28 }
  0x1d   : > { %p2964_p9 = scmp.ne.s32.totalorder %s3194_s28, %s2963_s14  ;;  %p2972_p12 = scmp.lt.s32.totalorder %s2963_s14, %s2963_s14 }
  0x1f   : > { %p2966_p10 = pnand %p2964_p9, %p2952_p13  ;;  %p2973_p0 = por %p2972_p12, %p2971_p2 }
  0x21   : > { %p2967_p1 = pneg %p2966_p10 }
  0x23   : > { %p2974_p6 = pnand %p2973_p0, %p2967_p1 }
  0x25   : > { %2977 = shalt.err (!%p2974_p6)
}
  0x26   : > { %s3110_s15 = smov 256   ;;  %s3111_s16 = smov 16  }
  0x27   : > { %2561 = dma.hbm_to_vmem [thread:$0]  (!%p3201_p11), %s3400_s1, 24576, %s3194_s28, [#allocation6], %s3110_s15, %s3110_s15, %s3111_s16  }
  0x28   : > { %s2978_s7 = scalar_lea.hbm %s3402_s3, 4096 }
  0x29   : > { %p2979_p2 = scmp.ne.s32.totalorder %s3402_s3, %s2978_s7  ;;  %p2985_p10 = scmp.lt.u32.totalorder %s2978_s7, %s3402_s3 }
  0x2b   : > { %p2981_p1 = pnand %p2979_p2, %p2952_p13 }
  0x2d   : > { %p2982_p6 = pneg %p2981_p1 }
  0x2f   : > { %p2987_p3 = pnand %p2985_p10, %p2982_p6 }
  0x31   : > { %2990 = shalt.err (!%p2987_p3)
}
  0x32   : > { %s2991_s28 = scalar_lea.vmem %s3205_s6, 4096  ;;  %p2999_p12 = scmp.lt.s32.totalorder %s3205_s6, %s3205_s6 }
  0x33   : > { %p2992_p5 = scmp.ne.s32.totalorder %s3205_s6, %s2991_s28  ;;  %p3000_p0 = scmp.lt.s32.totalorder %s2991_s28, %s2991_s28 }
  0x35   : > { %p2994_p7 = pnand %p2992_p5, %p2952_p13  ;;  %p3001_p2 = por %p3000_p0, %p2999_p12 }
  0x37   : > { %p2995_p9 = pneg %p2994_p7 }
  0x39   : > { %p3002_p1 = pnand %p3001_p2, %p2995_p9 }
  0x3b   : > { %3005 = shalt.err (!%p3002_p1)
}
  0x3c   : > { %s3112_s12 = smov 64   ;;  %s3113_s13 = smov 4  }
  0x3d   : > { %2564 = dma.hbm_to_vmem [thread:$0]  (!%p3201_p11), %s3402_s3, 4096, %s3205_s6, [#allocation6], %s3112_s12, %s3112_s12, %s3113_s13  }
  0x3e   : > { %s3260_s16 = sadd.s32 1, %s3106_s21   ;;  %s29_s23 = sadd.s32 1, %s3102_s20 }
  0x3f   : > { %s26_s17 = ssub.s32 %s3106_s21, %s3260_s16  ;;  %p36_p6 = scmp.ne.s32.totalorder %s3102_s20, %s3098_s19 }
  0x40   : > { %p27_p13 = scmp.eq.s32.totalorder %s26_s17, 0  ;;  %p37_p10 = scmp.eq.s32.totalorder %s3106_s21, 0 }
  0x41   : > { %p3412_p5 = scmp.eq.s32.totalorder %s3171_s22, 1  ;;  %p2575_p9 = scmp.lt.s32.totalorder %s3106_s21, 2 }
  0x42   : > { %s3269_s27 = scalar_select %p27_p13, %s3102_s20, %s29_s23  }
  0x43   : > { %p38_p3 = por %p37_p10, %p36_p6  ;;  %p3273_p7 = por %p3412_p5, %p36_p6 }
  0x44   : > { %s208_s29 = sand.u32 1, %s3102_s20   ;;  %s2544_s6 = smul.u32 768, %s3106_s21 }
  0x45   : > { %s3413_s30 = scalar_select %p3273_p7, 1, 0 }
  0x46   : > { %s2543_s7 = smul.u32 48, %s208_s29  ;;  %p3280_p11 = pnand %p2575_p9, %p38_p3 }
  0x47   : > { %s3287_s11 = scalar_lea.hbm %s3399_s0, %s2544_s6  ;;  %s3291_s13 = scalar_lea.sflag [#allocation3], %s208_s29 }
  0x48   : > { %s212_s28 = scalar_lea.vmem [#allocation2], %s2543_s7  ;;  %s3006_s14 = scalar_lea.hbm %s3287_s11, 768 }
  0x49   : > { %s220_s12 = sshll.u32 %s212_s28, 4  ;;  %p3007_p12 = scmp.ne.s32.totalorder %s3287_s11, %s3006_s14  ;;  %s3289_s12 = int_to_ptr.vmem [resolvable:$true] %s220_s12 }
  0x4a   : > { %p3008_p0 = pneg %p3280_p11  ;;  %s3011_s23 = scalar_lea.hbm %s3399_s0, 1536 }
  0x4b   : > { %p3012_p13 = scmp.lt.u32.totalorder %s3287_s11, %s3399_s0  ;;  %p3013_p6 = scmp.lt.u32.totalorder %s3011_s23, %s3006_s14 }
  0x4c   : > { %p3009_p2 = pnand %p3008_p0, %p3007_p12  ;;  %p3015_p3 = scmp.lt.u32.totalorder %s3006_s14, %s3287_s11 }
  0x4d   : > { %p3014_p10 = por %p3013_p6, %p3012_p13 }
  0x4e   : > { %p3010_p1 = pneg %p3009_p2 }
  0x4f   : > { %p3016_p5 = por %p3015_p3, %p3014_p10 }
  0x51   : > { %p3017_p9 = pnand %p3016_p5, %p3010_p1 }
  0x53   : > { %3020 = shalt.err (!%p3017_p9)
}
  0x54   : > { %s3021_s29 = scalar_lea.vmem %s3289_s12, 768  ;;  %s3114_s7 = smov [#allocation2]  }
  0x55   : > { %p3022_p12 = scmp.ne.s32.totalorder %s3289_s12, %s3021_s29  ;;  %s3026_s10 = sshll.u32 %s3114_s7, 4  ;;  %s3027_s10 = int_to_ptr.vmem [resolvable:$false] %s3026_s10 }
  0x56   : > { %s3028_s28 = scalar_lea.vmem %s3027_s10, 1536  ;;  %p3029_p4 = scmp.lt.s32.totalorder %s3289_s12, %s3027_s10 }
  0x57   : > { %p3024_p2 = pnand %p3022_p12, %p3008_p0  ;;  %p3030_p13 = scmp.lt.s32.totalorder %s3028_s28, %s3021_s29 }
  0x59   : > { %p3025_p7 = pneg %p3024_p2  ;;  %p3031_p6 = por %p3030_p13, %p3029_p4 }
  0x5b   : > { %p3032_p10 = pnand %p3031_p6, %p3025_p7 }
  0x5d   : > { %3035 = shalt.err (!%p3032_p10)
}
  0x5e   : > { %s3115_s14 = smov 384   ;;  %s3116_s15 = smov 24  }
  0x5f   : > { %2568 = dma.hbm_to_vmem [thread:$0]  (!%p3280_p11), %s3287_s11, 768, %s3289_s12, %s3291_s13, %s3115_s14, %s3115_s14, %s3116_s15  }
  0x60   : > { %232 = sbr.rel (%p3190_p8) target bundleno = 760 (0x2f8), region = 40  ;;  %s3322_s17 = sand.u32 (!%p3190_p8), 1, %s3098_s19  }
  0x61   : > { %s2545_s23 = smul.u32 (!%p3190_p8), 48, %s3322_s17  ;;  %s235_s6 = scalar_lea.sflag (!%p3190_p8), [#allocation3], %s3322_s17 }
  0x62   : > { %p3415_p4 = scmp.ne.s32.totalorder (!%p3190_p8), %s3408_s24, 0 }
  0x63   : > { %s3326_s9 = scalar_lea.vmem (!%p3190_p8), [#allocation2], %s2545_s23 }
  0x67   : > { %3081 = dma.done.wait (%p3415_p4), %s235_s6, 768  }
  0x68   : > { %3083 = vsyncadd (%p3415_p4), %s235_s6, 4294966528  ;;  %p3416_p7 = scmp.eq.s32.totalorder %s3171_s22, 0 }
  0x6a   : > { %3085 = dma.done.wait (%p3416_p7), [#allocation6], 28672   ;;  %p3417_p8 = pmov %p3416_p7 }
  0x6b   : > { %v2621_v0 = vld [vmem:[#allocation5 + $0x4] ss:$16 sps:$4 sm:$0xff]   ;;  %v2623_v1 = vld [vmem:[#allocation5 + $0xc] ss:$16 sps:$4 sm:$0xff]   ;;  %v2625_v2 = vld [vmem:[#allocation5] ss:$16 sps:$4 sm:$0xff]  }
  0x6c   : > { %3087 = vsyncadd (%p3417_p8), [#allocation6], 4294938624  ;;  %1486 = vmatprep.subr.bf16.mxu0 %v2621_v0  ;;  %v2626_v3 = vld [vmem:[#allocation5 + $0x8] ss:$16 sps:$4 sm:$0xff]   ;;  %1615 = vmatprep.subr.bf16.mxu1 %v2623_v1  ;;  %v2627_v4 = vld [vmem:[#allocation5 + $0x24] ss:$16 sps:$4 sm:$0xff]  }
  0x6d   : > { %1487 = vmatpush1.bf16.msra.mxu0 %v2625_v2  ;;  %1616 = vmatpush1.bf16.msra.mxu1 %v2626_v3  ;;  %v2629_v5 = vld [vmem:[#allocation5 + $0x2c] ss:$16 sps:$4 sm:$0xff]   ;;  %v2631_v6 = vld [vmem:[#allocation5 + $0x20] ss:$16 sps:$4 sm:$0xff]   ;;  %v2632_v7 = vld [vmem:[#allocation5 + $0x28] ss:$16 sps:$4 sm:$0xff]  }
  0x6e   : > { %1488 = vmatprep.subr.bf16.mxu0 %v2627_v4  ;;  %1617 = vmatprep.subr.bf16.mxu1 %v2629_v5  ;;  %v2633_v8 = vld [vmem:[#allocation5 + $0x44] ss:$16 sps:$4 sm:$0xff]   ;;  %v2635_v9 = vld [vmem:[#allocation5 + $0x4c] ss:$16 sps:$4 sm:$0xff]   ;;  %v2637_v10 = vld [vmem:[#allocation5 + $0x40] ss:$16 sps:$4 sm:$0xff]  }
  0x6f   : > { %v2638_v11 = vld [vmem:[#allocation5 + $0x48] ss:$16 sps:$4 sm:$0xff]   ;;  %v2639_v12 = vld [vmem:[#allocation5 + $0x64] ss:$16 sps:$4 sm:$0xff]   ;;  %v2641_v13 = vld [vmem:[#allocation5 + $0x6c] ss:$16 sps:$4 sm:$0xff]  }
  0x70   : > { %v2643_v14 = vld [vmem:[#allocation5 + $0x60] ss:$16 sps:$4 sm:$0xff]   ;;  %v2644_v15 = vld [vmem:[#allocation5 + $0x68] ss:$16 sps:$4 sm:$0xff]   ;;  %v2645_v16 = vld [vmem:[#allocation5 + $0x84] ss:$16 sps:$4 sm:$0xff]  }
  0x71   : > { %1489 = vmatpush1.bf16.msra.mxu0 %v2631_v6  ;;  %1618 = vmatpush1.bf16.msra.mxu1 %v2632_v7  ;;  %v2647_v17 = vld [vmem:[#allocation5 + $0x8c] ss:$16 sps:$4 sm:$0xff]   ;;  %v2649_v18 = vld [vmem:[#allocation5 + $0x80] ss:$16 sps:$4 sm:$0xff]   ;;  %v2650_v19 = vld [vmem:[#allocation5 + $0x88] ss:$16 sps:$4 sm:$0xff]  }
  0x72   : > { %1490 = vmatprep.subr.bf16.mxu0 %v2633_v8  ;;  %1619 = vmatprep.subr.bf16.mxu1 %v2635_v9  ;;  %v2651_v20 = vld [vmem:[#allocation5 + $0xa4] ss:$16 sps:$4 sm:$0xff]   ;;  %v2653_v21 = vld [vmem:[#allocation5 + $0xac] ss:$16 sps:$4 sm:$0xff]   ;;  %v2655_v22 = vld [vmem:[#allocation5 + $0xa0] ss:$16 sps:$4 sm:$0xff]  }
  0x73   : > { %v2656_v23 = vld [vmem:[#allocation5 + $0xa8] ss:$16 sps:$4 sm:$0xff]   ;;  %v2657_v24 = vld [vmem:[#allocation5 + $0xc4] ss:$16 sps:$4 sm:$0xff]   ;;  %v2659_v25 = vld [vmem:[#allocation5 + $0xcc] ss:$16 sps:$4 sm:$0xff]  }
  0x74   : > { %v2661_v26 = vld [vmem:[#allocation5 + $0xc0] ss:$16 sps:$4 sm:$0xff]   ;;  %v2662_v27 = vld [vmem:[#allocation5 + $0xc8] ss:$16 sps:$4 sm:$0xff]   ;;  %v2663_v28 = vld [vmem:[#allocation5 + $0xe4] ss:$16 sps:$4 sm:$0xff]  }
  0x75   : > { %1491 = vmatpush1.bf16.msra.mxu0 %v2637_v10  ;;  %1620 = vmatpush1.bf16.msra.mxu1 %v2638_v11  ;;  %v2665_v29 = vld [vmem:[#allocation5 + $0xec] ss:$16 sps:$4 sm:$0xff]   ;;  %v2667_v30 = vld [vmem:[#allocation5 + $0xe0] ss:$16 sps:$4 sm:$0xff]   ;;  %v2668_v31 = vld [vmem:[#allocation5 + $0xe8] ss:$16 sps:$4 sm:$0xff]  }
  0x76   : > { %1492 = vmatprep.subr.bf16.mxu0 %v2639_v12  ;;  %1621 = vmatprep.subr.bf16.mxu1 %v2641_v13  ;;  %v2669_v32 = vld [vmem:[#allocation5 + $0x104] ss:$16 sps:$4 sm:$0xff]   ;;  %v2671_v33 = vld [vmem:[#allocation5 + $0x10c] ss:$16 sps:$4 sm:$0xff]   ;;  %v2673_v34 = vld [vmem:[#allocation5 + $0x100] ss:$16 sps:$4 sm:$0xff]  }
  0x77   : > { %v2674_v35 = vld [vmem:[#allocation5 + $0x108] ss:$16 sps:$4 sm:$0xff]   ;;  %v2675_v36 = vld [vmem:[#allocation5 + $0x124] ss:$16 sps:$4 sm:$0xff]   ;;  %v2677_v37 = vld [vmem:[#allocation5 + $0x12c] ss:$16 sps:$4 sm:$0xff]  }
  0x78   : > { %v2679_v38 = vld [vmem:[#allocation5 + $0x120] ss:$16 sps:$4 sm:$0xff]   ;;  %v2680_v39 = vld [vmem:[#allocation5 + $0x128] ss:$16 sps:$4 sm:$0xff]   ;;  %v2681_v40 = vld [vmem:[#allocation5 + $0x144] ss:$16 sps:$4 sm:$0xff]  }
  0x79   : > { %1493 = vmatpush1.bf16.msra.mxu0 %v2643_v14  ;;  %1622 = vmatpush1.bf16.msra.mxu1 %v2644_v15  ;;  %v2683_v41 = vld [vmem:[#allocation5 + $0x14c] ss:$16 sps:$4 sm:$0xff]   ;;  %v2685_v42 = vld [vmem:[#allocation5 + $0x140] ss:$16 sps:$4 sm:$0xff]   ;;  %v2686_v43 = vld [vmem:[#allocation5 + $0x148] ss:$16 sps:$4 sm:$0xff]  }
  0x7a   : > { %1494 = vmatprep.subr.bf16.mxu0 %v2645_v16  ;;  %1623 = vmatprep.subr.bf16.mxu1 %v2647_v17  ;;  %v2687_v44 = vld [vmem:[#allocation5 + $0x164] ss:$16 sps:$4 sm:$0xff]   ;;  %v2689_v45 = vld [vmem:[#allocation5 + $0x16c] ss:$16 sps:$4 sm:$0xff]   ;;  %v2691_v46 = vld [vmem:[#allocation5 + $0x160] ss:$16 sps:$4 sm:$0xff]  }
  0x7b   : > { %v2692_v47 = vld [vmem:[#allocation5 + $0x168] ss:$16 sps:$4 sm:$0xff]   ;;  %v2719_v48 = vld [vmem:[%s3326_s9 + $0x4] ss:$24 sps:$4 sm:$0xff]   ;;  %v2697_v51 = vld [vmem:[#allocation5 + $0x180] ss:$16 sps:$4 sm:$0xff]  }
  0x7c   : > { %v2693_v49 = vld [vmem:[#allocation5 + $0x184] ss:$16 sps:$4 sm:$0xff]   ;;  %v2695_v50 = vld [vmem:[#allocation5 + $0x18c] ss:$16 sps:$4 sm:$0xff]   ;;  %1518 = vmatprep.mubr.bf16.mxu0 %v2719_v48  ;;  %1647 = vmatprep.mubr.bf16.mxu1 %v2719_v48  ;;  %v2698_v52 = vld [vmem:[#allocation5 + $0x188] ss:$16 sps:$4 sm:$0xff]  }
  0x7d   : > { %1495 = vmatpush1.bf16.msra.mxu0 %v2649_v18  ;;  %1624 = vmatpush1.bf16.msra.mxu1 %v2650_v19  ;;  %v2699_v53 = vld [vmem:[#allocation5 + $0x1a4] ss:$16 sps:$4 sm:$0xff]   ;;  %v2701_v54 = vld [vmem:[#allocation5 + $0x1ac] ss:$16 sps:$4 sm:$0xff]   ;;  %v2703_v55 = vld [vmem:[#allocation5 + $0x1a0] ss:$16 sps:$4 sm:$0xff]  }
  0x7e   : > { %1496 = vmatprep.subr.bf16.mxu0 %v2651_v20  ;;  %1625 = vmatprep.subr.bf16.mxu1 %v2653_v21  ;;  %v2704_v56 = vld [vmem:[#allocation5 + $0x1a8] ss:$16 sps:$4 sm:$0xff]   ;;  %v2705_v57 = vld [vmem:[#allocation5 + $0x1c4] ss:$16 sps:$4 sm:$0xff]   ;;  %v2707_v58 = vld [vmem:[#allocation5 + $0x1cc] ss:$16 sps:$4 sm:$0xff]  }
  0x7f   : > { %v2709_v59 = vld [vmem:[#allocation5 + $0x1c0] ss:$16 sps:$4 sm:$0xff]   ;;  %v2710_v60 = vld [vmem:[#allocation5 + $0x1c8] ss:$16 sps:$4 sm:$0xff]   ;;  %v2711_v61 = vld [vmem:[#allocation5 + $0x1e4] ss:$16 sps:$4 sm:$0xff]  }
  0x80   : > { %v2713_v62 = vld [vmem:[#allocation5 + $0x1ec] ss:$16 sps:$4 sm:$0xff]   ;;  %v2715_v63 = vld [vmem:[#allocation5 + $0x1e0] ss:$16 sps:$4 sm:$0xff]   ;;  %v2716_v0 = vld [vmem:[#allocation5 + $0x1e8] ss:$16 sps:$4 sm:$0xff]  }
  0x81   : > { %1497 = vmatpush1.bf16.msra.mxu0 %v2655_v22  ;;  %1626 = vmatpush1.bf16.msra.mxu1 %v2656_v23  ;;  %v2722_v1 = vld [vmem:[#allocation5 + $0x204] ss:$16 sps:$4 sm:$0xff]   ;;  %v2725_v2 = vld [vmem:[#allocation5 + $0x20c] ss:$16 sps:$4 sm:$0xff]   ;;  %v2717_v3 = vld [vmem:[%s3326_s9] ss:$24 sps:$4 sm:$0xff]  }
  0x82   : > { %1498 = vmatprep.subr.bf16.mxu0 %v2657_v24  ;;  %1627 = vmatprep.subr.bf16.mxu1 %v2659_v25  ;;  %v2720_v4 = vld [vmem:[#allocation5 + $0x200] ss:$16 sps:$4 sm:$0xff]   ;;  %v2723_v5 = vld [vmem:[#allocation5 + $0x208] ss:$16 sps:$4 sm:$0xff]   ;;  %v2728_v6 = vld [vmem:[#allocation5 + $0x224] ss:$16 sps:$4 sm:$0xff]  }
  0x83   : > { %v2731_v7 = vld [vmem:[#allocation5 + $0x22c] ss:$16 sps:$4 sm:$0xff]   ;;  %v2726_v8 = vld [vmem:[#allocation5 + $0x220] ss:$16 sps:$4 sm:$0xff]   ;;  %v2729_v9 = vld [vmem:[#allocation5 + $0x228] ss:$16 sps:$4 sm:$0xff]  }
  0x84   : > { %v2734_v10 = vld [vmem:[#allocation5 + $0x244] ss:$16 sps:$4 sm:$0xff]   ;;  %v2737_v11 = vld [vmem:[#allocation5 + $0x24c] ss:$16 sps:$4 sm:$0xff]   ;;  %v2732_v12 = vld [vmem:[#allocation5 + $0x240] ss:$16 sps:$4 sm:$0xff]  }
  0x85   : > { %1499 = vmatpush1.bf16.msra.mxu0 %v2661_v26  ;;  %1628 = vmatpush1.bf16.msra.mxu1 %v2662_v27  ;;  %v2735_v13 = vld [vmem:[#allocation5 + $0x248] ss:$16 sps:$4 sm:$0xff]   ;;  %v2740_v14 = vld [vmem:[#allocation5 + $0x264] ss:$16 sps:$4 sm:$0xff]   ;;  %v2743_v15 = vld [vmem:[#allocation5 + $0x26c] ss:$16 sps:$4 sm:$0xff]  }
  0x86   : > { %1500 = vmatprep.subr.bf16.mxu0 %v2663_v28  ;;  %1629 = vmatprep.subr.bf16.mxu1 %v2665_v29  ;;  %v2738_v16 = vld [vmem:[#allocation5 + $0x260] ss:$16 sps:$4 sm:$0xff]   ;;  %v2741_v17 = vld [vmem:[#allocation5 + $0x268] ss:$16 sps:$4 sm:$0xff]   ;;  %v2746_v18 = vld [vmem:[#allocation5 + $0x284] ss:$16 sps:$4 sm:$0xff]  }
  0x87   : > { %v2749_v19 = vld [vmem:[#allocation5 + $0x28c] ss:$16 sps:$4 sm:$0xff]   ;;  %v2744_v20 = vld [vmem:[#allocation5 + $0x280] ss:$16 sps:$4 sm:$0xff]   ;;  %v2747_v21 = vld [vmem:[#allocation5 + $0x288] ss:$16 sps:$4 sm:$0xff]  }
  0x88   : > { %v2752_v22 = vld [vmem:[#allocation5 + $0x2a4] ss:$16 sps:$4 sm:$0xff]   ;;  %v2755_v23 = vld [vmem:[#allocation5 + $0x2ac] ss:$16 sps:$4 sm:$0xff]   ;;  %v2750_v24 = vld [vmem:[#allocation5 + $0x2a0] ss:$16 sps:$4 sm:$0xff]  }
  0x89   : > { %1501 = vmatpush1.bf16.msra.mxu0 %v2667_v30  ;;  %1630 = vmatpush1.bf16.msra.mxu1 %v2668_v31  ;;  %v2753_v25 = vld [vmem:[#allocation5 + $0x2a8] ss:$16 sps:$4 sm:$0xff]   ;;  %v2758_v26 = vld [vmem:[#allocation5 + $0x2c4] ss:$16 sps:$4 sm:$0xff]   ;;  %v2761_v27 = vld [vmem:[#allocation5 + $0x2cc] ss:$16 sps:$4 sm:$0xff]  }
  0x8a   : > { %1502 = vmatprep.subr.bf16.mxu0 %v2669_v32  ;;  %1631 = vmatprep.subr.bf16.mxu1 %v2671_v33  ;;  %v2756_v28 = vld [vmem:[#allocation5 + $0x2c0] ss:$16 sps:$4 sm:$0xff]   ;;  %v2759_v29 = vld [vmem:[#allocation5 + $0x2c8] ss:$16 sps:$4 sm:$0xff]   ;;  %v2818_v30 = vld [vmem:[%s3326_s9 + $0xc] ss:$24 sps:$4 sm:$0xff]  }
  0x8b   : > { %v2764_v31 = vld [vmem:[#allocation5 + $0x2e4] ss:$16 sps:$4 sm:$0xff]   ;;  %v2767_v32 = vld [vmem:[#allocation5 + $0x2ec] ss:$16 sps:$4 sm:$0xff]   ;;  %v2762_v33 = vld [vmem:[#allocation5 + $0x2e0] ss:$16 sps:$4 sm:$0xff]  }
  0x8c   : > { %v2791_v48 = vld [vmem:[#allocation5 + $0x36c] ss:$16 sps:$4 sm:$0xff]   ;;  %s2228_s8 = sshll.u32 %s3322_s17, 3  ;;  %s2469_s13 = sshll.u32 %s3171_s22, 7 }
  0x8d   : > { %1503 = vmatpush1.bf16.msra.mxu0 %v2673_v34  ;;  %1632 = vmatpush1.bf16.msra.mxu1 %v2674_v35  ;;  %v2765_v34 = vld [vmem:[#allocation5 + $0x2e8] ss:$16 sps:$4 sm:$0xff]   ;;  %v2770_v35 = vld [vmem:[#allocation5 + $0x304] ss:$16 sps:$4 sm:$0xff]   ;;  %s272_s29 = scalar_lea.vmem [#allocation8], %s2228_s8  ;;  %s3353_s14 = scalar_lea.hbm %s3404_s5, %s2469_s13 }
  0x8e   : > { %1504 = vmatprep.subr.bf16.mxu0 %v2675_v36  ;;  %1633 = vmatprep.subr.bf16.mxu1 %v2677_v37  ;;  %v2773_v36 = vld [vmem:[#allocation5 + $0x30c] ss:$16 sps:$4 sm:$0xff]   ;;  %v2768_v37 = vld [vmem:[#allocation5 + $0x300] ss:$16 sps:$4 sm:$0xff]   ;;  %s2125_s7 = sshll.u32 %s272_s29, 4  ;;  %s2112_s15 = scalar_lea.sflag [#allocation4], %s3322_s17  ;;  %s3355_s7 = int_to_ptr.vmem [resolvable:$true] %s2125_s7 }
  0x8f   : > { %s3036_s23 = scalar_lea.vmem %s3355_s7, 128  ;;  %p3418_p0 = scmp.ne.s32.totalorder %s3413_s30, 0 }
  0x90   : > { %p3037_p11 = scmp.ne.s32.totalorder %s3355_s7, %s3036_s23  ;;  %s3117_s22 = smov [#allocation8]  }
  0x91   : > { %1505 = vmatpush1.bf16.msra.mxu0 %v2679_v38  ;;  %1634 = vmatpush1.bf16.msra.mxu1 %v2680_v39  ;;  %v2771_v38 = vld [vmem:[#allocation5 + $0x308] ss:$16 sps:$4 sm:$0xff]   ;;  %v2776_v39 = vld [vmem:[#allocation5 + $0x324] ss:$16 sps:$4 sm:$0xff]   ;;  %s3040_s6 = sshll.u32 %s3117_s22, 4  ;;  %s3041_s6 = int_to_ptr.vmem [resolvable:$false] %s3040_s6 }
  0x92   : > { %1506 = vmatprep.subr.bf16.mxu0 %v2681_v40  ;;  %1635 = vmatprep.subr.bf16.mxu1 %v2683_v41  ;;  %v2779_v40 = vld [vmem:[#allocation5 + $0x32c] ss:$16 sps:$4 sm:$0xff]   ;;  %v2774_v41 = vld [vmem:[#allocation5 + $0x320] ss:$16 sps:$4 sm:$0xff]   ;;  %p3038_p1 = pnand %p3037_p11, %p3418_p0  ;;  %p3043_p5 = scmp.lt.s32.totalorder %s3355_s7, %s3041_s6 }
  0x94   : > { %p3039_p3 = pneg %p3038_p1 }
  0x95   : > { %1507 = vmatpush1.bf16.msra.mxu0 %v2685_v42  ;;  %1636 = vmatpush1.bf16.msra.mxu1 %v2686_v43  ;;  %v2777_v42 = vld [vmem:[#allocation5 + $0x328] ss:$16 sps:$4 sm:$0xff]   ;;  %v2782_v43 = vld [vmem:[#allocation5 + $0x344] ss:$16 sps:$4 sm:$0xff]  }
  0x96   : > { %1508 = vmatprep.subr.bf16.mxu0 %v2687_v44  ;;  %1637 = vmatprep.subr.bf16.mxu1 %v2689_v45  ;;  %v2785_v44 = vld [vmem:[#allocation5 + $0x34c] ss:$16 sps:$4 sm:$0xff]   ;;  %v2780_v45 = vld [vmem:[#allocation5 + $0x340] ss:$16 sps:$4 sm:$0xff]  }
  0x99   : > { %1509 = vmatpush1.bf16.msra.mxu0 %v2691_v46  ;;  %1638 = vmatpush1.bf16.msra.mxu1 %v2692_v47  ;;  %v2783_v46 = vld [vmem:[#allocation5 + $0x348] ss:$16 sps:$4 sm:$0xff]   ;;  %v2788_v47 = vld [vmem:[#allocation5 + $0x364] ss:$16 sps:$4 sm:$0xff]  }
  0x9a   : > { %1510 = vmatprep.subr.bf16.mxu0 %v2693_v49  ;;  %1639 = vmatprep.subr.bf16.mxu1 %v2695_v50  ;;  %v2786_v49 = vld [vmem:[#allocation5 + $0x360] ss:$16 sps:$4 sm:$0xff]   ;;  %v2789_v50 = vld [vmem:[#allocation5 + $0x368] ss:$16 sps:$4 sm:$0xff]  }
  0x9d   : > { %1511 = vmatpush1.bf16.msra.mxu0 %v2697_v51  ;;  %1640 = vmatpush1.bf16.msra.mxu1 %v2698_v52  ;;  %v2794_v51 = vld [vmem:[#allocation5 + $0x384] ss:$16 sps:$4 sm:$0xff]   ;;  %v2797_v52 = vld [vmem:[#allocation5 + $0x38c] ss:$16 sps:$4 sm:$0xff]  }
  0x9e   : > { %1512 = vmatprep.subr.bf16.mxu0 %v2699_v53  ;;  %1641 = vmatprep.subr.bf16.mxu1 %v2701_v54  ;;  %v2792_v53 = vld [vmem:[#allocation5 + $0x380] ss:$16 sps:$4 sm:$0xff]   ;;  %v2795_v54 = vld [vmem:[#allocation5 + $0x388] ss:$16 sps:$4 sm:$0xff]  }
  0xa1   : > { %1513 = vmatpush1.bf16.msra.mxu0 %v2703_v55  ;;  %1642 = vmatpush1.bf16.msra.mxu1 %v2704_v56  ;;  %v2800_v55 = vld [vmem:[#allocation5 + $0x3a4] ss:$16 sps:$4 sm:$0xff]   ;;  %v2803_v56 = vld [vmem:[#allocation5 + $0x3ac] ss:$16 sps:$4 sm:$0xff]  }
  0xa2   : > { %1514 = vmatprep.subr.bf16.mxu0 %v2705_v57  ;;  %1643 = vmatprep.subr.bf16.mxu1 %v2707_v58  ;;  %v2798_v57 = vld [vmem:[#allocation5 + $0x3a0] ss:$16 sps:$4 sm:$0xff]   ;;  %v2801_v58 = vld [vmem:[#allocation5 + $0x3a8] ss:$16 sps:$4 sm:$0xff]  }
  0xa5   : > { %1515 = vmatpush1.bf16.msra.mxu0 %v2709_v59  ;;  %1644 = vmatpush1.bf16.msra.mxu1 %v2710_v60  ;;  %v2806_v59 = vld [vmem:[#allocation5 + $0x3c4] ss:$16 sps:$4 sm:$0xff]   ;;  %v2809_v60 = vld [vmem:[#allocation5 + $0x3cc] ss:$16 sps:$4 sm:$0xff]  }
  0xa6   : > { %1516 = vmatprep.subr.bf16.mxu0 %v2711_v61  ;;  %1645 = vmatprep.subr.bf16.mxu1 %v2713_v62  ;;  %v2804_v61 = vld [vmem:[#allocation5 + $0x3c0] ss:$16 sps:$4 sm:$0xff]   ;;  %v2807_v62 = vld [vmem:[#allocation5 + $0x3c8] ss:$16 sps:$4 sm:$0xff]  }
  0xa9   : > { %1517 = vmatpush1.bf16.msra.mxu0 %v2715_v63  ;;  %1646 = vmatpush1.bf16.msra.mxu1 %v2716_v0  ;;  %v2812_v63 = vld [vmem:[#allocation5 + $0x3e4] ss:$16 sps:$4 sm:$0xff]   ;;  %v2815_v0 = vld [vmem:[#allocation5 + $0x3ec] ss:$16 sps:$4 sm:$0xff]  }
  0xaa   : > { %1529 = vmatprep.subr.bf16.mxu0 %v2722_v1  ;;  %1658 = vmatprep.subr.bf16.mxu1 %v2725_v2  ;;  %v2810_v1 = vld [vmem:[#allocation5 + $0x3e0] ss:$16 sps:$4 sm:$0xff]   ;;  %v2813_v2 = vld [vmem:[#allocation5 + $0x3e8] ss:$16 sps:$4 sm:$0xff]  }
  0xac   : > { %1519 = vmatmul.mubr.bf16.vlgmr.msra.gmra.mrb[0].mxu0 %v2717_v3  ;;  %1648 = vmatmul.mubr.bf16.vlgmr.msra.gmra.mrb[0].mxu1 %v2717_v3  ;;  %v2821_v3 = vld [vmem:[#allocation5 + $0x404] ss:$16 sps:$4 sm:$0xff]  }
  0xad   : > { %1530 = vmatpush1.bf16.msra.mxu0 %v2720_v4  ;;  %1659 = vmatpush1.bf16.msra.mxu1 %v2723_v5  ;;  %v2824_v4 = vld [vmem:[#allocation5 + $0x40c] ss:$16 sps:$4 sm:$0xff]   ;;  %v2816_v5 = vld [vmem:[%s3326_s9 + $0x8] ss:$24 sps:$4 sm:$0xff]  }
  0xae   : > { %1531 = vmatprep.subr.bf16.mxu0 %v2728_v6  ;;  %1660 = vmatprep.subr.bf16.mxu1 %v2731_v7  ;;  %v2819_v6 = vld [vmem:[#allocation5 + $0x400] ss:$16 sps:$4 sm:$0xff]   ;;  %v2822_v7 = vld [vmem:[#allocation5 + $0x408] ss:$16 sps:$4 sm:$0xff]  }
  0xaf   : > { %1561 = vmatprep.mubr.bf16.mxu0 %v2818_v30  ;;  %1690 = vmatprep.mubr.bf16.mxu1 %v2818_v30  ;;  %v2860_v30 = vld [vmem:[#allocation5 + $0x4cc] ss:$16 sps:$4 sm:$0xff]  }
  0xb1   : > { %1532 = vmatpush1.bf16.msra.mxu0 %v2726_v8  ;;  %1661 = vmatpush1.bf16.msra.mxu1 %v2729_v9  ;;  %v2827_v8 = vld [vmem:[#allocation5 + $0x424] ss:$16 sps:$4 sm:$0xff]   ;;  %v2830_v9 = vld [vmem:[#allocation5 + $0x42c] ss:$16 sps:$4 sm:$0xff]  }
  0xb2   : > { %1533 = vmatprep.subr.bf16.mxu0 %v2734_v10  ;;  %1662 = vmatprep.subr.bf16.mxu1 %v2737_v11  ;;  %v2825_v10 = vld [vmem:[#allocation5 + $0x420] ss:$16 sps:$4 sm:$0xff]   ;;  %v2828_v11 = vld [vmem:[#allocation5 + $0x428] ss:$16 sps:$4 sm:$0xff]  }
  0xb5   : > { %1534 = vmatpush1.bf16.msra.mxu0 %v2732_v12  ;;  %1663 = vmatpush1.bf16.msra.mxu1 %v2735_v13  ;;  %v2917_v12 = vld [vmem:[%s3326_s9 + $0x14] ss:$24 sps:$4 sm:$0xff]  }
  0xb6   : > { %1535 = vmatprep.subr.bf16.mxu0 %v2740_v14  ;;  %1664 = vmatprep.subr.bf16.mxu1 %v2743_v15  ;;  %v2833_v13 = vld [vmem:[#allocation5 + $0x444] ss:$16 sps:$4 sm:$0xff]   ;;  %v2836_v14 = vld [vmem:[#allocation5 + $0x44c] ss:$16 sps:$4 sm:$0xff]   ;;  %v2831_v15 = vld [vmem:[#allocation5 + $0x440] ss:$16 sps:$4 sm:$0xff]  }
  0xb9   : > { %1536 = vmatpush1.bf16.msra.mxu0 %v2738_v16  ;;  %1665 = vmatpush1.bf16.msra.mxu1 %v2741_v17  ;;  %v2834_v16 = vld [vmem:[#allocation5 + $0x448] ss:$16 sps:$4 sm:$0xff]   ;;  %v2839_v17 = vld [vmem:[#allocation5 + $0x464] ss:$16 sps:$4 sm:$0xff]  }
  0xba   : > { %1537 = vmatprep.subr.bf16.mxu0 %v2746_v18  ;;  %1666 = vmatprep.subr.bf16.mxu1 %v2749_v19  ;;  %v2842_v18 = vld [vmem:[#allocation5 + $0x46c] ss:$16 sps:$4 sm:$0xff]   ;;  %v2837_v19 = vld [vmem:[#allocation5 + $0x460] ss:$16 sps:$4 sm:$0xff]  }
  0xbd   : > { %1538 = vmatpush1.bf16.msra.mxu0 %v2744_v20  ;;  %1667 = vmatpush1.bf16.msra.mxu1 %v2747_v21  ;;  %v2840_v20 = vld [vmem:[#allocation5 + $0x468] ss:$16 sps:$4 sm:$0xff]   ;;  %v2845_v21 = vld [vmem:[#allocation5 + $0x484] ss:$16 sps:$4 sm:$0xff]  }
  0xbe   : > { %1539 = vmatprep.subr.bf16.mxu0 %v2752_v22  ;;  %1668 = vmatprep.subr.bf16.mxu1 %v2755_v23  ;;  %v2848_v22 = vld [vmem:[#allocation5 + $0x48c] ss:$16 sps:$4 sm:$0xff]   ;;  %v2843_v23 = vld [vmem:[#allocation5 + $0x480] ss:$16 sps:$4 sm:$0xff]  }
  0xc1   : > { %1540 = vmatpush1.bf16.msra.mxu0 %v2750_v24  ;;  %1669 = vmatpush1.bf16.msra.mxu1 %v2753_v25  ;;  %v2846_v24 = vld [vmem:[#allocation5 + $0x488] ss:$16 sps:$4 sm:$0xff]   ;;  %v2851_v25 = vld [vmem:[#allocation5 + $0x4a4] ss:$16 sps:$4 sm:$0xff]  }
  0xc2   : > { %1541 = vmatprep.subr.bf16.mxu0 %v2758_v26  ;;  %1670 = vmatprep.subr.bf16.mxu1 %v2761_v27  ;;  %v2854_v26 = vld [vmem:[#allocation5 + $0x4ac] ss:$16 sps:$4 sm:$0xff]   ;;  %v2849_v27 = vld [vmem:[#allocation5 + $0x4a0] ss:$16 sps:$4 sm:$0xff]  }
  0xc5   : > { %1542 = vmatpush1.bf16.msra.mxu0 %v2756_v28  ;;  %1671 = vmatpush1.bf16.msra.mxu1 %v2759_v29  ;;  %v2852_v28 = vld [vmem:[#allocation5 + $0x4a8] ss:$16 sps:$4 sm:$0xff]   ;;  %v2857_v29 = vld [vmem:[#allocation5 + $0x4c4] ss:$16 sps:$4 sm:$0xff]  }
  0xc6   : > { %1543 = vmatprep.subr.bf16.mxu0 %v2764_v31  ;;  %1672 = vmatprep.subr.bf16.mxu1 %v2767_v32  ;;  %v2855_v31 = vld [vmem:[#allocation5 + $0x4c0] ss:$16 sps:$4 sm:$0xff]   ;;  %v2858_v32 = vld [vmem:[#allocation5 + $0x4c8] ss:$16 sps:$4 sm:$0xff]  }
  0xc9   : > { %1544 = vmatpush1.bf16.msra.mxu0 %v2762_v33  ;;  %1673 = vmatpush1.bf16.msra.mxu1 %v2765_v34  ;;  %v2863_v33 = vld [vmem:[#allocation5 + $0x4e4] ss:$16 sps:$4 sm:$0xff]   ;;  %v2866_v34 = vld [vmem:[#allocation5 + $0x4ec] ss:$16 sps:$4 sm:$0xff]  }
  0xca   : > { %1545 = vmatprep.subr.bf16.mxu0 %v2770_v35  ;;  %1674 = vmatprep.subr.bf16.mxu1 %v2773_v36  ;;  %v2861_v35 = vld [vmem:[#allocation5 + $0x4e0] ss:$16 sps:$4 sm:$0xff]   ;;  %v2864_v36 = vld [vmem:[#allocation5 + $0x4e8] ss:$16 sps:$4 sm:$0xff]  }
  0xcd   : > { %1546 = vmatpush1.bf16.msra.mxu0 %v2768_v37  ;;  %1675 = vmatpush1.bf16.msra.mxu1 %v2771_v38  ;;  %v2869_v37 = vld [vmem:[#allocation5 + $0x504] ss:$16 sps:$4 sm:$0xff]   ;;  %v2872_v38 = vld [vmem:[#allocation5 + $0x50c] ss:$16 sps:$4 sm:$0xff]  }
  0xce   : > { %1547 = vmatprep.subr.bf16.mxu0 %v2776_v39  ;;  %1676 = vmatprep.subr.bf16.mxu1 %v2779_v40  ;;  %v2867_v39 = vld [vmem:[#allocation5 + $0x500] ss:$16 sps:$4 sm:$0xff]   ;;  %v2870_v40 = vld [vmem:[#allocation5 + $0x508] ss:$16 sps:$4 sm:$0xff]  }
  0xd1   : > { %1548 = vmatpush1.bf16.msra.mxu0 %v2774_v41  ;;  %1677 = vmatpush1.bf16.msra.mxu1 %v2777_v42  ;;  %v2875_v41 = vld [vmem:[#allocation5 + $0x524] ss:$16 sps:$4 sm:$0xff]   ;;  %v2878_v42 = vld [vmem:[#allocation5 + $0x52c] ss:$16 sps:$4 sm:$0xff]  }
  0xd2   : > { %1549 = vmatprep.subr.bf16.mxu0 %v2782_v43  ;;  %1678 = vmatprep.subr.bf16.mxu1 %v2785_v44  ;;  %v2873_v43 = vld [vmem:[#allocation5 + $0x520] ss:$16 sps:$4 sm:$0xff]   ;;  %v2876_v44 = vld [vmem:[#allocation5 + $0x528] ss:$16 sps:$4 sm:$0xff]  }
  0xd5   : > { %1550 = vmatpush1.bf16.msra.mxu0 %v2780_v45  ;;  %1679 = vmatpush1.bf16.msra.mxu1 %v2783_v46  ;;  %v2881_v45 = vld [vmem:[#allocation5 + $0x544] ss:$16 sps:$4 sm:$0xff]   ;;  %v2884_v46 = vld [vmem:[#allocation5 + $0x54c] ss:$16 sps:$4 sm:$0xff]  }
  0xd6   : > { %1551 = vmatprep.subr.bf16.mxu0 %v2788_v47  ;;  %1680 = vmatprep.subr.bf16.mxu1 %v2791_v48  ;;  %v2879_v47 = vld [vmem:[#allocation5 + $0x540] ss:$16 sps:$4 sm:$0xff]   ;;  %v2882_v48 = vld [vmem:[#allocation5 + $0x548] ss:$16 sps:$4 sm:$0xff]  }
  0xd9   : > { %1552 = vmatpush1.bf16.msra.mxu0 %v2786_v49  ;;  %1681 = vmatpush1.bf16.msra.mxu1 %v2789_v50  ;;  %v2887_v49 = vld [vmem:[#allocation5 + $0x564] ss:$16 sps:$4 sm:$0xff]   ;;  %v2890_v50 = vld [vmem:[#allocation5 + $0x56c] ss:$16 sps:$4 sm:$0xff]  }
  0xda   : > { %1553 = vmatprep.subr.bf16.mxu0 %v2794_v51  ;;  %1682 = vmatprep.subr.bf16.mxu1 %v2797_v52  ;;  %v2885_v51 = vld [vmem:[#allocation5 + $0x560] ss:$16 sps:$4 sm:$0xff]   ;;  %v2888_v52 = vld [vmem:[#allocation5 + $0x568] ss:$16 sps:$4 sm:$0xff]  }
  0xdd   : > { %1554 = vmatpush1.bf16.msra.mxu0 %v2792_v53  ;;  %1683 = vmatpush1.bf16.msra.mxu1 %v2795_v54  ;;  %v2893_v53 = vld [vmem:[#allocation5 + $0x584] ss:$16 sps:$4 sm:$0xff]   ;;  %v2896_v54 = vld [vmem:[#allocation5 + $0x58c] ss:$16 sps:$4 sm:$0xff]  }
  0xde   : > { %1555 = vmatprep.subr.bf16.mxu0 %v2800_v55  ;;  %1684 = vmatprep.subr.bf16.mxu1 %v2803_v56  ;;  %v2891_v55 = vld [vmem:[#allocation5 + $0x580] ss:$16 sps:$4 sm:$0xff]   ;;  %v2894_v56 = vld [vmem:[#allocation5 + $0x588] ss:$16 sps:$4 sm:$0xff]  }
  0xe1   : > { %1556 = vmatpush1.bf16.msra.mxu0 %v2798_v57  ;;  %1685 = vmatpush1.bf16.msra.mxu1 %v2801_v58  ;;  %v2899_v57 = vld [vmem:[#allocation5 + $0x5a4] ss:$16 sps:$4 sm:$0xff]   ;;  %v2902_v58 = vld [vmem:[#allocation5 + $0x5ac] ss:$16 sps:$4 sm:$0xff]  }
  0xe2   : > { %1557 = vmatprep.subr.bf16.mxu0 %v2806_v59  ;;  %1686 = vmatprep.subr.bf16.mxu1 %v2809_v60  ;;  %v2897_v59 = vld [vmem:[#allocation5 + $0x5a0] ss:$16 sps:$4 sm:$0xff]   ;;  %v2900_v60 = vld [vmem:[#allocation5 + $0x5a8] ss:$16 sps:$4 sm:$0xff]  }
  0xe5   : > { %1558 = vmatpush1.bf16.msra.mxu0 %v2804_v61  ;;  %1687 = vmatpush1.bf16.msra.mxu1 %v2807_v62  ;;  %v2905_v61 = vld [vmem:[#allocation5 + $0x5c4] ss:$16 sps:$4 sm:$0xff]   ;;  %v2908_v62 = vld [vmem:[#allocation5 + $0x5cc] ss:$16 sps:$4 sm:$0xff]  }
  0xe6   : > { %1559 = vmatprep.subr.bf16.mxu0 %v2812_v63  ;;  %1688 = vmatprep.subr.bf16.mxu1 %v2815_v0  ;;  %v2903_v63 = vld [vmem:[#allocation5 + $0x5c0] ss:$16 sps:$4 sm:$0xff]   ;;  %v2906_v0 = vld [vmem:[#allocation5 + $0x5c8] ss:$16 sps:$4 sm:$0xff]  }
  0xe9   : > { %1560 = vmatpush1.bf16.msra.mxu0 %v2810_v1  ;;  %1689 = vmatpush1.bf16.msra.mxu1 %v2813_v2  ;;  %v2911_v1 = vld [vmem:[#allocation5 + $0x5e4] ss:$16 sps:$4 sm:$0xff]   ;;  %v2914_v2 = vld [vmem:[#allocation5 + $0x5ec] ss:$16 sps:$4 sm:$0xff]  }
  0xea   : > { %1572 = vmatprep.subr.bf16.mxu0 %v2821_v3  ;;  %1701 = vmatprep.subr.bf16.mxu1 %v2824_v4  ;;  %v2909_v3 = vld [vmem:[#allocation5 + $0x5e0] ss:$16 sps:$4 sm:$0xff]   ;;  %v2912_v4 = vld [vmem:[#allocation5 + $0x5e8] ss:$16 sps:$4 sm:$0xff]  }
  0xec   : > { %1562 = vmatmul.mubr.bf16.vlgmr.msra.gmra.mrb[0].mxu0 %v2816_v5  ;;  %1691 = vmatmul.mubr.bf16.vlgmr.msra.gmra.mrb[0].mxu1 %v2816_v5  ;;  %v2918_v5 = vld [vmem:[#allocation7 + $0x40] sm:$0xff]  }
  0xed   : > { %1573 = vmatpush1.bf16.msra.mxu0 %v2819_v6  ;;  %1702 = vmatpush1.bf16.msra.mxu1 %v2822_v7  ;;  %v2919_v6 = vld [vmem:[#allocation7 + $0xc0] sm:$0xff]  }
  0xee   : > { %1574 = vmatprep.subr.bf16.mxu0 %v2827_v8  ;;  %1703 = vmatprep.subr.bf16.mxu1 %v2830_v9  ;;  %v2915_v7 = vld [vmem:[%s3326_s9 + $0x10] ss:$24 sps:$4 sm:$0xff]   ;;  %s3042_s9 = scalar_lea.vmem %s3041_s6, 256 }
  0xef   : > { %1604 = vmatprep.mubr.bf16.mxu0 %v2917_v12  ;;  %1733 = vmatprep.mubr.bf16.mxu1 %v2917_v12  ;;  %v2920_v8 = vld [vmem:[#allocation7] sm:$0xff]   ;;  %v2924_v12 = vld [vmem:[#allocation7 + $0x8] sm:$0xff]   ;;  %p3044_p9 = scmp.lt.s32.totalorder %s3042_s9, %s3036_s23 }
  0xf0   : > { %v2921_v9 = vld [vmem:[#allocation7 + $0x80] sm:$0xff]  }
  0xf1   : > { %1575 = vmatpush1.bf16.msra.mxu0 %v2825_v10  ;;  %1704 = vmatpush1.bf16.msra.mxu1 %v2828_v11  ;;  %v2922_v10 = vld [vmem:[#allocation7 + $0x48] sm:$0xff]   ;;  %p3045_p12 = por %p3044_p9, %p3043_p5 }
  0xf2   : > { %1576 = vmatprep.subr.bf16.mxu0 %v2833_v13  ;;  %1705 = vmatprep.subr.bf16.mxu1 %v2836_v14  ;;  %v2923_v11 = vld [vmem:[#allocation7 + $0xc8] sm:$0xff]   ;;  %v2926_v14 = vld [vmem:[#allocation7 + $0x50] sm:$0xff]  }
  0xf3   : > { %v2925_v13 = vld [vmem:[#allocation7 + $0x88] sm:$0xff]   ;;  %p3046_p2 = pnand %p3045_p12, %p3039_p3 }
  0xf5   : > { %1577 = vmatpush1.bf16.msra.mxu0 %v2831_v15  ;;  %1706 = vmatpush1.bf16.msra.mxu1 %v2834_v16  ;;  %v2927_v15 = vld [vmem:[#allocation7 + $0xd0] sm:$0xff]  }
  0xf6   : > { %1578 = vmatprep.subr.bf16.mxu0 %v2839_v17  ;;  %1707 = vmatprep.subr.bf16.mxu1 %v2842_v18  ;;  %v2928_v16 = vld [vmem:[#allocation7 + $0x10] sm:$0xff]   ;;  %v2930_v18 = vld [vmem:[#allocation7 + $0x58] sm:$0xff]  }
  0xf7   : > { %v2929_v17 = vld [vmem:[#allocation7 + $0x90] sm:$0xff]  }
  0xf9   : > { %1579 = vmatpush1.bf16.msra.mxu0 %v2837_v19  ;;  %1708 = vmatpush1.bf16.msra.mxu1 %v2840_v20  ;;  %v2931_v19 = vld [vmem:[#allocation7 + $0xd8] sm:$0xff]  }
  0xfa   : > { %1580 = vmatprep.subr.bf16.mxu0 %v2845_v21  ;;  %1709 = vmatprep.subr.bf16.mxu1 %v2848_v22  ;;  %v2932_v20 = vld [vmem:[#allocation7 + $0x18] sm:$0xff]   ;;  %v2934_v22 = vld [vmem:[#allocation7 + $0x60] sm:$0xff]  }
  0xfb   : > { %v2933_v21 = vld [vmem:[#allocation7 + $0x98] sm:$0xff]  }
  0xfd   : > { %1581 = vmatpush1.bf16.msra.mxu0 %v2843_v23  ;;  %1710 = vmatpush1.bf16.msra.mxu1 %v2846_v24  ;;  %v2935_v23 = vld [vmem:[#allocation7 + $0xe0] sm:$0xff]  }
  0xfe   : > { %1582 = vmatprep.subr.bf16.mxu0 %v2851_v25  ;;  %1711 = vmatprep.subr.bf16.mxu1 %v2854_v26  ;;  %v2936_v24 = vld [vmem:[#allocation7 + $0x20] sm:$0xff]   ;;  %v2938_v26 = vld [vmem:[#allocation7 + $0x68] sm:$0xff]  }
  0xff   : > { %v2937_v25 = vld [vmem:[#allocation7 + $0xa0] sm:$0xff]  }
 0x101   : > { %1583 = vmatpush1.bf16.msra.mxu0 %v2849_v27  ;;  %1712 = vmatpush1.bf16.msra.mxu1 %v2852_v28  ;;  %v2939_v27 = vld [vmem:[#allocation7 + $0xe8] sm:$0xff]  }
 0x102   : > { %1584 = vmatprep.subr.bf16.mxu0 %v2857_v29  ;;  %1713 = vmatprep.subr.bf16.mxu1 %v2860_v30  ;;  %v2940_v28 = vld [vmem:[#allocation7 + $0x28] sm:$0xff]   ;;  %v2942_v30 = vld [vmem:[#allocation7 + $0x70] sm:$0xff]  }
 0x103   : > { %v2941_v29 = vld [vmem:[#allocation7 + $0xa8] sm:$0xff]  }
 0x105   : > { %1585 = vmatpush1.bf16.msra.mxu0 %v2855_v31  ;;  %1714 = vmatpush1.bf16.msra.mxu1 %v2858_v32  ;;  %v2943_v31 = vld [vmem:[#allocation7 + $0xf0] sm:$0xff]  }
 0x106   : > { %1586 = vmatprep.subr.bf16.mxu0 %v2863_v33  ;;  %1715 = vmatprep.subr.bf16.mxu1 %v2866_v34  ;;  %v2944_v32 = vld [vmem:[#allocation7 + $0x30] sm:$0xff]   ;;  %v2946_v34 = vld [vmem:[#allocation7 + $0x78] sm:$0xff]  }
 0x107   : > { %v2945_v33 = vld [vmem:[#allocation7 + $0xb0] sm:$0xff]  }
 0x109   : > { %1587 = vmatpush1.bf16.msra.mxu0 %v2861_v35  ;;  %1716 = vmatpush1.bf16.msra.mxu1 %v2864_v36  ;;  %v2947_v35 = vld [vmem:[#allocation7 + $0xf8] sm:$0xff]  }
 0x10a   : > { %1588 = vmatprep.subr.bf16.mxu0 %v2869_v37  ;;  %1717 = vmatprep.subr.bf16.mxu1 %v2872_v38  ;;  %v2948_v36 = vld [vmem:[#allocation7 + $0x38] sm:$0xff]   ;;  %v476_v38 = vlaneseq }
 0x10b   : > { %v2949_v37 = vld [vmem:[#allocation7 + $0xb8] sm:$0xff]  }
 0x10d   : > { %1589 = vmatpush1.bf16.msra.mxu0 %v2867_v39  ;;  %1718 = vmatpush1.bf16.msra.mxu1 %v2870_v40  ;;  %v477_v39 = vshrl.u32 %v476_v38, 7 }
 0x10e   : > { %1590 = vmatprep.subr.bf16.mxu0 %v2875_v41  ;;  %1719 = vmatprep.subr.bf16.mxu1 %v2878_v42  ;;  %v474_v42 = vld [vmem:[%s3401_s2] sm:$0xf] }
 0x10f   : > { %v478_v40 = vsub.s32 0, %v477_v39  ;;  %v486_v41 = vsub.s32 2, %v477_v39 }
 0x111   : > { %1591 = vmatpush1.bf16.msra.mxu0 %v2873_v43  ;;  %1720 = vmatpush1.bf16.msra.mxu1 %v2876_v44  ;;  %v482_v43 = vsub.s32 1, %v477_v39  ;;  %v490_v44 = vsub.s32 3, %v477_v39 }
 0x112   : > { %1592 = vmatprep.subr.bf16.mxu0 %v2881_v45  ;;  %1721 = vmatprep.subr.bf16.mxu1 %v2884_v46  ;;  %v479_v45 = vrot.slane %v474_v42, %v478_v40  ;;  %v487_v46 = vrot.slane %v474_v42, %v486_v41 }
 0x115   : > { %1593 = vmatpush1.bf16.msra.mxu0 %v2879_v47  ;;  %1722 = vmatpush1.bf16.msra.mxu1 %v2882_v48  ;;  %v483_v47 = vrot.slane %v474_v42, %v482_v43  ;;  %v491_v48 = vrot.slane %v474_v42, %v490_v44 }
 0x116   : > { %1594 = vmatprep.subr.bf16.mxu0 %v2887_v49  ;;  %1723 = vmatprep.subr.bf16.mxu1 %v2890_v50 }
 0x119   : > { %1595 = vmatpush1.bf16.msra.mxu0 %v2885_v51  ;;  %1724 = vmatpush1.bf16.msra.mxu1 %v2888_v52 }
 0x11a   : > { %1596 = vmatprep.subr.bf16.mxu0 %v2893_v53  ;;  %1725 = vmatprep.subr.bf16.mxu1 %v2896_v54 }
 0x11d   : > { %1597 = vmatpush1.bf16.msra.mxu0 %v2891_v55  ;;  %1726 = vmatpush1.bf16.msra.mxu1 %v2894_v56 }
 0x11e   : > { %1598 = vmatprep.subr.bf16.mxu0 %v2899_v57  ;;  %1727 = vmatprep.subr.bf16.mxu1 %v2902_v58 }
 0x121   : > { %1599 = vmatpush1.bf16.msra.mxu0 %v2897_v59  ;;  %1728 = vmatpush1.bf16.msra.mxu1 %v2900_v60 }
 0x122   : > { %1600 = vmatprep.subr.bf16.mxu0 %v2905_v61  ;;  %1729 = vmatprep.subr.bf16.mxu1 %v2908_v62 }
 0x125   : > { %1601 = vmatpush1.bf16.msra.mxu0 %v2903_v63  ;;  %1730 = vmatpush1.bf16.msra.mxu1 %v2906_v0 }
 0x126   : > { %1602 = vmatprep.subr.bf16.mxu0 %v2911_v1  ;;  %1731 = vmatprep.subr.bf16.mxu1 %v2914_v2 }
 0x129   : > { %1603 = vmatpush1.bf16.msra.mxu0 %v2909_v3  ;;  %1732 = vmatpush1.bf16.msra.mxu1 %v2912_v4 }
 0x12a   : > { %2475 = vmatprep.subr.bf16.mxu0 %v2918_v5  ;;  %2497 = vmatprep.subr.bf16.mxu1 %v2919_v6 }
 0x12c   : > { %1605 = vmatmul.mubr.bf16.vlgmr.msra.gmra.mrb[0].mxu0 %v2915_v7  ;;  %1734 = vmatmul.mubr.bf16.vlgmr.msra.gmra.mrb[0].mxu1 %v2915_v7 }
 0x12d   : > { %2476 = vmatpush3.bf16.msra.mxu0 %v2920_v8  ;;  %2498 = vmatpush3.bf16.msra.mxu1 %v2921_v9 }
 0x12e   : > { %2477 = vmatprep.subr.bf16.mxu0 %v2922_v10  ;;  %2499 = vmatprep.subr.bf16.mxu1 %v2923_v11 }
 0x131   : > { %2478 = vmatpush3.bf16.msra.mxu0 %v2924_v12  ;;  %2500 = vmatpush3.bf16.msra.mxu1 %v2925_v13 }
 0x132   : > { %2479 = vmatprep.subr.bf16.mxu0 %v2926_v14  ;;  %2501 = vmatprep.subr.bf16.mxu1 %v2927_v15  ;;  %v2427_v15 = vld [vmem:[%s3403_s4] ss:$0 sm:$0xff] }
 0x135   : > { %2480 = vmatpush3.bf16.msra.mxu0 %v2928_v16  ;;  %2502 = vmatpush3.bf16.msra.mxu1 %v2929_v17 }
 0x136   : > { %2481 = vmatprep.subr.bf16.mxu0 %v2930_v18  ;;  %2503 = vmatprep.subr.bf16.mxu1 %v2931_v19 }
 0x139   : > { %2482 = vmatpush3.bf16.msra.mxu0 %v2932_v20  ;;  %2504 = vmatpush3.bf16.msra.mxu1 %v2933_v21 }
 0x13a   : > { %2483 = vmatprep.subr.bf16.mxu0 %v2934_v22  ;;  %2505 = vmatprep.subr.bf16.mxu1 %v2935_v23 }
 0x13d   : > { %2484 = vmatpush3.bf16.msra.mxu0 %v2936_v24  ;;  %2506 = vmatpush3.bf16.msra.mxu1 %v2937_v25 }
 0x13e   : > { %2485 = vmatprep.subr.bf16.mxu0 %v2938_v26  ;;  %2507 = vmatprep.subr.bf16.mxu1 %v2939_v27 }
 0x141   : > { %2486 = vmatpush3.bf16.msra.mxu0 %v2940_v28  ;;  %2508 = vmatpush3.bf16.msra.mxu1 %v2941_v29 }
 0x142   : > { %2487 = vmatprep.subr.bf16.mxu0 %v2942_v30  ;;  %2509 = vmatprep.subr.bf16.mxu1 %v2943_v31 }
 0x145   : > { %2488 = vmatpush3.bf16.msra.mxu0 %v2944_v32  ;;  %2510 = vmatpush3.bf16.msra.mxu1 %v2945_v33 }
 0x146   : > { %2489 = vmatprep.subr.bf16.mxu0 %v2946_v34  ;;  %2511 = vmatprep.subr.bf16.mxu1 %v2947_v35 }
 0x149   : > { %2490 = vmatpush3.bf16.msra.mxu0 %v2948_v36  ;;  %2512 = vmatpush3.bf16.msra.mxu1 %v2949_v37 }
 0x1ff   : > { %v1606_v49 = vpop.f32.mrb[0].mxu0  ;;  %v1735_v50 = vpop.f32.mrb[0].mxu1 }
 0x200   : > { %v2519_v51 = vadd.f32 %v1606_v49, %v479_v45  ;;  %v2523_v52 = vadd.f32 %v1735_v50, %v487_v46  ;;  %v1608_v53 = vpop.f32.mrb[1].mxu0  ;;  %v1737_v54 = vpop.f32.mrb[1].mxu1 }
 0x201   : > { %v2520_v55 = vadd.f32 %v1608_v53, %v483_v47  ;;  %v2524_v56 = vadd.f32 %v1737_v54, %v491_v48  ;;  %v1610_v57 = vpop.f32.mrb[2].mxu0  ;;  %v1739_v58 = vpop.f32.mrb[2].mxu1 }
 0x202   : > { %v2521_v59 = vadd.f32 %v1610_v57, %v479_v45  ;;  %v2525_v60 = vadd.f32 %v1739_v58, %v487_v46  ;;  %v1612_v61 = vpop.f32.mrb[3].mxu0  ;;  %v1741_v62 = vpop.f32.mrb[3].mxu1  ;;  %v1744_v1 = vmax.f32 %v2519_v51, 0.0  ;;  %v1746_v2 = vmax.f32 %v2523_v52, 0.0 }
 0x203   : > { %v2522_v63 = vadd.f32 %v1612_v61, %v483_v47  ;;  %v2526_v0 = vadd.f32 %v1741_v62, %v491_v48  ;;  %v1745_v5 = vmax.f32 %v2520_v55, 0.0  ;;  %v1747_v6 = vmax.f32 %v2524_v56, 0.0 }
 0x204   : > { %v1748_v3 = vmax.f32 %v2521_v59, 0.0  ;;  %v1750_v4 = vmax.f32 %v2525_v60, 0.0 }
 0x205   : > { %v1749_v7 = vmax.f32 %v2522_v63, 0.0  ;;  %v1751_v8 = vmax.f32 %v2526_v0, 0.0 }
 0x206   : > { %v1752_v9 = vpack.c.bf16 %v1748_v3, %v1744_v1  ;;  %v1754_v10 = vpack.c.bf16 %v1750_v4, %v1746_v2 }
 0x207   : > { %v1753_v11 = vpack.c.bf16 %v1749_v7, %v1745_v5  ;;  %v1755_v12 = vpack.c.bf16 %v1751_v8, %v1747_v6 }
 0x209   : > { %2051 = vmatprep.mubr.bf16.mxu0 %v1753_v11  ;;  %2092 = vmatprep.mubr.bf16.mxu1 %v1755_v12 }
 0x20a   : > { %2052 = vmatmul.mubr.bf16.vlgmr.msra.gmra.mrb[4].mxu0 %v1752_v9  ;;  %2093 = vmatmul.mubr.bf16.vlgmr.msra.gmra.mrb[4].mxu1 %v1754_v10 }
 0x2dd   : > { %v2491_v13 = vpop.f32.mrb[4].mxu0  ;;  %v2513_v14 = vpop.f32.mrb[4].mxu1 }
 0x2de   : > { %v2492_v16 = vpop.f32.mrb[5].mxu0  ;;  %v2514_v17 = vpop.f32.mrb[5].mxu1 }
 0x2df   : > { %v2493_v18 = vadd.f32 %v2492_v16, %v2491_v13  ;;  %v2515_v19 = vadd.f32 %v2514_v17, %v2513_v14  ;;  %v2494_v20 = vpop.f32.mrb[6].mxu0  ;;  %v2516_v21 = vpop.f32.mrb[6].mxu1 }
 0x2e0   : > { %v2495_v22 = vpop.f32.mrb[7].mxu0  ;;  %v2517_v23 = vpop.f32.mrb[7].mxu1 }
 0x2e1   : > { %v2054_v24 = vadd.f32 %v2493_v18, %v2427_v15  ;;  %v2496_v25 = vadd.f32 %v2495_v22, %v2494_v20  ;;  %v2518_v26 = vadd.f32 %v2517_v23, %v2516_v21 }
 0x2e3   : > { %v2095_v27 = vadd.f32 %v2515_v19, %v2054_v24  ;;  %v2057_v28 = vadd.f32 %v2496_v25, %v2427_v15 }
 0x2e5   : > { %v2098_v29 = vadd.f32 %v2518_v26, %v2057_v28 }
 0x2e7   : > { %v2473_v30 = vpack.c.bf16 %v2098_v29, %v2095_v27 }
 0x2e9   : > { %2474 = vst [vmem:[%s272_s29] sm:$0xff] %v2473_v30  }
 0x2ea   : > { %3049 = shalt.err (!%p3046_p2)
}
 0x2eb   : > { %s3050_s24 = scalar_lea.hbm %s3353_s14, 128  ;;  %s3054_s11 = scalar_lea.hbm %s3404_s5, 256 }
 0x2ec   : > { %p3051_p13 = scmp.ne.s32.totalorder %s3353_s14, %s3050_s24  ;;  %p3055_p4 = scmp.lt.u32.totalorder %s3353_s14, %s3404_s5 }
 0x2ed   : > { %p3056_p7 = scmp.lt.u32.totalorder %s3054_s11, %s3050_s24  ;;  %p3058_p11 = scmp.lt.u32.totalorder %s3050_s24, %s3353_s14 }
 0x2ee   : > { %p3052_p6 = pnand %p3051_p13, %p3418_p0 }
 0x2ef   : > { %p3057_p8 = por %p3056_p7, %p3055_p4 }
 0x2f0   : > { %p3053_p10 = pneg %p3052_p6 }
 0x2f1   : > { %p3059_p1 = por %p3058_p11, %p3057_p8 }
 0x2f3   : > { %p3060_p3 = pnand %p3059_p1, %p3053_p10 }
 0x2f5   : > { %3063 = shalt.err (!%p3060_p3)
}
 0x2f6   : > { %s3118_s29 = smov 64   ;;  %s3119_s10 = smov 4  }
 0x2f7   : > { %2556 = dma.vmem_to_hbm [thread:$0]  (%p3418_p0), %s3355_s7, 128, %s3353_s14, %s2112_s15, %s3118_s29, %s3118_s29, %s3119_s10  }
 0x2f8 PF: > { %s2140_s28 = sand.u32 1, %s3094_s18   ;;  %p3419_p5 = scmp.ne.s32.totalorder %s3409_s25, 0 }
 0x2f9   : > { %p3420_p9 = scmp.ge.s32.totalorder %s3106_s21, 2  ;;  %s2141_s23 = scalar_lea.sflag [#allocation4], %s2140_s28 }
 0x2fb   : > { %p2570_p12 = pnand %p3420_p9, %p3419_p5 }
 0x2fd   : > { %3089 = dma.done.wait (!%p2570_p12), %s2141_s23, 128  }
 0x2fe   : > { %3091 = vsyncadd (!%p2570_p12), %s2141_s23, 4294967168  ;;  %p19_p2 = scmp.ge.s32.totalorder %s3260_s16, 4   ;;  %s3421_s18 = smov %s3098_s19 }
 0x2ff   : > { %s3422_s19 = smov %s3102_s20  ;;  %s3423_s20 = smov %s3269_s27 }
 0x300   : > { %s3424_s21 = smov %s3260_s16  ;;  %21 = sbr.rel (!%p19_p2) target bundleno = 6 (0x6), region = 93 }
 0x307   :  { %2146 = vsyncpa [#allocation3], 1 }
 0x308   :  { %2148 = vsyncpa [#allocation3 + $0x1], 1 }
 0x309   :  { %2149 = vsyncpa [#allocation6], 1 }
 0x30a   :  { %2150 = vsyncpa [#allocation4], 1 }
 0x30b   :  { %2152 = vsyncpa [#allocation4 + $0x1], 1 }

</bundles_post_ra>
